<compile_context>
chip_gen: v7x
topology: tpu7x:2x2x1
jax: 0.10.0
libtpu: 0.0.40
codegen_flags: <defaults>
</compile_context>

<pallas_src>
import functools

import jax
import jax.numpy as jnp
from jax.experimental import pallas as pl
from jax.experimental.pallas import tpu as pltpu


def _round_up(v, m):
    return ((v + m - 1) // m) * m


def _choose_tb(B):
    """Batch-tile size: big tiles to amortize per-step overhead, but keep ~4 grid
    steps when B is large so megacore sharding on v7x still has work to split."""
    if B <= 512:
        return B                                   # single step for small batches
    tb = _round_up(pl.cdiv(B, 4), 128)             # aim for ~4 grid steps
    return max(512, min(tb, 2048))                 # clamp: amortize 0.35us/step


def _mlp5_kernel(x_ref, w_ref, b_ref, o_ref, *, n_in):
    # x_ref : (TB, n_in)  bf16     streamed per grid step (auto double-buffered)
    # w_ref : (4, D, D)   bf16     hidden weights, zero-padded, VMEM-resident
    # b_ref : (8, D)      f32      rows 0..3 = hidden biases, row 4 = w5 row,
    #                              row 5 col 0 = b5
    # o_ref : (TB, 1)     f32

    # Layer 1: bf16 x bf16 -> f32 accumulation on the MXU.  Slice the Ref so only
    # the live (n_in, D) sub-tile is loaded.
    h = jnp.dot(x_ref[...], w_ref[0, :n_in, :],
                preferred_element_type=jnp.float32)
    h = jnp.maximum(h + b_ref[0:1, :], 0.0)

    # Layers 2..4: full 128-wide padded matmuls (zero padding => exact).  Cast the
    # activations to bf16 just before the dot; keep bias-add / ReLU in f32.
    for l in range(1, 4):
        h = jnp.dot(h.astype(jnp.bfloat16), w_ref[l],
                    preferred_element_type=jnp.float32)
        h = jnp.maximum(h + b_ref[l:l + 1, :], 0.0)

    # Final Linear(n4, 1): f32 VPU multiply + XLU lane reduction (no N=1 MXU matmul).
    o_ref[...] = (jnp.sum(h * b_ref[4:5, :], axis=-1, keepdims=True)
                  + b_ref[5:6, 0:1])


@jax.jit
def nn_5l_forward(x, w_pack, b_pack):
    B, n_in = x.shape
    tb = _choose_tb(B)
    grid = (pl.cdiv(B, tb),)

    x_bf16 = x.astype(jnp.bfloat16)     # x is ~97% of HBM bytes -> halve its traffic
    kernel = functools.partial(_mlp5_kernel, n_in=n_in)

    return pl.pallas_call(
        kernel,
        out_shape=jax.ShapeDtypeStruct((B, 1), jnp.float32),
        grid=grid,
        in_specs=[
            # Activations: streamed, one batch tile per grid step.
            pl.BlockSpec((tb, n_in), lambda i: (i, 0)),
            # Packed weights / biases: constant block index -> VMEM-resident, no re-DMA.
            pl.BlockSpec(w_pack.shape, lambda i: (0, 0, 0)),
            pl.BlockSpec(b_pack.shape, lambda i: (0, 0)),
        ],
        out_specs=pl.BlockSpec((tb, 1), lambda i: (i, 0)),
        compiler_params=pltpu.CompilerParams(
            dimension_semantics=("parallel",),   # megacore sharding on v7x
        ),
    )(x_bf16, w_pack, b_pack)


def _init_linear(key, fan_in, fan_out):
    """Deterministic init mimicking torch.nn.Linear default (uniform +/- 1/sqrt(fan_in))."""
    kw, kb = jax.random.split(key)
    bound = 1.0 / jnp.sqrt(jnp.float32(fan_in))
    # W stored as (in, out) == torch weight (out, in) transposed.
    w = jax.random.uniform(kw, (fan_in, fan_out), jnp.float32, -bound, bound)
    b = jax.random.uniform(kb, (fan_out,), jnp.float32, -bound, bound)
    return w, b


def pack_params(params):
    """Pack 5 (W, b) layers into (w_pack, b_pack) with zero padding to 128 lanes.

    w_pack: (4, D, D) bf16  hidden-layer weights, W_l at [l, :in_l, :out_l]
    b_pack: (8, D)    f32   rows 0..3 = hidden biases, row 4 = final weight as a row,
                            row 5, col 0 = final bias.  (8 rows = fp32 sublane padding.)
    """
    dims = [w.shape[0] for w, _ in params] + [w.shape[1] for w, _ in params]
    d_pad = _round_up(max(dims + [128]), 128)

    w_pack = jnp.zeros((4, d_pad, d_pad), jnp.float32)
    b_pack = jnp.zeros((8, d_pad), jnp.float32)
    for l in range(4):
        w, b = params[l]
        w_pack = w_pack.at[l, :w.shape[0], :w.shape[1]].set(w)
        b_pack = b_pack.at[l, :b.shape[0]].set(b)
    w5, b5 = params[4]                      # (n4, 1), (1,)
    b_pack = b_pack.at[4, :w5.shape[0]].set(w5[:, 0])
    b_pack = b_pack.at[5, 0].set(b5[0])
    return w_pack.astype(jnp.bfloat16), b_pack


def reference_forward(x, params):
    """Pure-JAX reference with the same numerics as the kernel: bf16 operands into
    each hidden matmul, f32 accumulation, f32 bias-add/ReLU, f32 final layer."""
    h = x
    for w, b in params[:4]:
        h = jnp.maximum(
            jnp.dot(h.astype(jnp.bfloat16), w.astype(jnp.bfloat16),
                    preferred_element_type=jnp.float32) + b, 0.0)
    w5, b5 = params[4]
    return jnp.dot(h, w5, preferred_element_type=jnp.float32) + b5


if __name__ == "__main__":
    # Shapes consistent with the module: n_inputs=32, n1=64, n2=64, n3=32, n4=32, out=1.
    n_inputs, n1, n2, n3, n4 = 32, 64, 64, 32, 32

    key = jax.random.PRNGKey(0)
    k_x, k_x2, k_x3, k1, k2, k3, k4, k5 = jax.random.split(key, 8)

    params = [
        _init_linear(k1, n_inputs, n1),
        _init_linear(k2, n1, n2),
        _init_linear(k3, n2, n3),
        _init_linear(k4, n3, n4),
        _init_linear(k5, n4, 1),
    ]
    w_pack, b_pack = pack_params(params)

    # Small-batch check (single grid step).
    x = jax.random.normal(k_x, (8, n_inputs), jnp.float32)
    out = jax.block_until_ready(nn_5l_forward(x, w_pack, b_pack))
    ref = reference_forward(x, params)
    assert out.shape == (8, 1), out.shape
    assert jnp.allclose(out, ref, atol=1e-2, rtol=1e-2)

    # Batch-tiled check (grid of 4, weights held resident across steps).
    x2 = jax.random.normal(k_x2, (2048, n_inputs), jnp.float32)
    out2 = jax.block_until_ready(nn_5l_forward(x2, w_pack, b_pack))
    ref2 = reference_forward(x2, params)
    assert out2.shape == (2048, 1), out2.shape
    assert jnp.allclose(out2, ref2, atol=1e-2, rtol=1e-2)

    # Ragged-batch check (partial last block, OOB-padded x tile, masked writeback).
    x3 = jax.random.normal(k_x3, (2000, n_inputs), jnp.float32)
    out3 = jax.block_until_ready(nn_5l_forward(x3, w_pack, b_pack))
    ref3 = reference_forward(x3, params)
    assert out3.shape == (2000, 1), out3.shape
    assert jnp.allclose(out3, ref3, atol=1e-2, rtol=1e-2)

    print("KERNEL_OK")
</pallas_src>

<mosaic_0001>
module attributes {stable_mosaic.version = 11 : i64} {
  func.func @_mlp5_kernel(%arg0: i32, %arg1: memref<8x32xbf16, #tpu.memory_space<vmem>>, %arg2: memref<4x128x128xbf16, #tpu.memory_space<vmem>>, %arg3: memref<8x128xf32, #tpu.memory_space<vmem>>, %arg4: memref<8x1xf32, #tpu.memory_space<vmem>>) attributes {dimension_semantics = [#tpu.dimension_semantics<parallel>], iteration_bounds = array<i64: 1>, scalar_prefetch = 0 : i64, scratch_operands = 0 : i64, tpu.core_type = #tpu.core_type<tc>, window_params = [{transform_indices = @transform_0, window_bounds = array<i64: 8, 32>}, {pipeline_mode = #tpu.pipeline_mode<synchronous>, transform_indices = @transform_1, window_bounds = array<i64: 4, 128, 128>}, {pipeline_mode = #tpu.pipeline_mode<synchronous>, transform_indices = @transform_2, window_bounds = array<i64: 8, 128>}, {transform_indices = @transform_3, window_bounds = array<i64: 8, 1>}]} {
    %c0 = arith.constant 0 : index
    %c0_0 = arith.constant 0 : index
    %0 = vector.load %arg1[%c0, %c0_0] : memref<8x32xbf16, #tpu.memory_space<vmem>>, vector<8x32xbf16>
    %c0_1 = arith.constant 0 : index
    %c0_2 = arith.constant 0 : index
    %c0_3 = arith.constant 0 : index
    %1 = vector.load %arg2[%c0_1, %c0_2, %c0_3] : memref<4x128x128xbf16, #tpu.memory_space<vmem>>, vector<1x32x128xbf16>
    %2 = vector.shape_cast %1 : vector<1x32x128xbf16> to vector<32x128xbf16>
    %cst = arith.constant dense<0.000000e+00> : vector<8x128xf32>
    %3 = tpu.matmul %0, %2, %cst {dimension_numbers = #tpu.dot_dimension_numbers<[1], [0], [0], [1], [0, 0, 1, 1], [], []>} : vector<8x32xbf16>, vector<32x128xbf16>, vector<8x128xf32> -> vector<8x128xf32>
    %c0_4 = arith.constant 0 : index
    %c0_5 = arith.constant 0 : index
    %4 = vector.load %arg3[%c0_4, %c0_5] : memref<8x128xf32, #tpu.memory_space<vmem>>, vector<1x128xf32>
    %5 = vector.broadcast %4 : vector<1x128xf32> to vector<8x128xf32>
    %6 = arith.addf %3, %5 : vector<8x128xf32>
    %cst_6 = arith.constant 0.000000e+00 : f32
    %7 = vector.broadcast %cst_6 : f32 to vector<8x128xf32>
    %8 = arith.maximumf %6, %7 : vector<8x128xf32>
    %9 = arith.truncf %8 : vector<8x128xf32> to vector<8x128xbf16>
    %c1 = arith.constant 1 : index
    %c0_7 = arith.constant 0 : index
    %c0_8 = arith.constant 0 : index
    %10 = vector.load %arg2[%c1, %c0_7, %c0_8] : memref<4x128x128xbf16, #tpu.memory_space<vmem>>, vector<1x128x128xbf16>
    %11 = vector.shape_cast %10 : vector<1x128x128xbf16> to vector<128x128xbf16>
    %cst_9 = arith.constant dense<0.000000e+00> : vector<8x128xf32>
    %12 = tpu.matmul %9, %11, %cst_9 {dimension_numbers = #tpu.dot_dimension_numbers<[1], [0], [0], [1], [0, 0, 1, 1], [], []>} : vector<8x128xbf16>, vector<128x128xbf16>, vector<8x128xf32> -> vector<8x128xf32>
    %c1_10 = arith.constant 1 : index
    %c0_11 = arith.constant 0 : index
    %13 = vector.load %arg3[%c1_10, %c0_11] : memref<8x128xf32, #tpu.memory_space<vmem>>, vector<1x128xf32>
    %14 = vector.broadcast %13 : vector<1x128xf32> to vector<8x128xf32>
    %15 = arith.addf %12, %14 : vector<8x128xf32>
    %cst_12 = arith.constant 0.000000e+00 : f32
    %16 = vector.broadcast %cst_12 : f32 to vector<8x128xf32>
    %17 = arith.maximumf %15, %16 : vector<8x128xf32>
    %18 = arith.truncf %17 : vector<8x128xf32> to vector<8x128xbf16>
    %c2 = arith.constant 2 : index
    %c0_13 = arith.constant 0 : index
    %c0_14 = arith.constant 0 : index
    %19 = vector.load %arg2[%c2, %c0_13, %c0_14] : memref<4x128x128xbf16, #tpu.memory_space<vmem>>, vector<1x128x128xbf16>
    %20 = vector.shape_cast %19 : vector<1x128x128xbf16> to vector<128x128xbf16>
    %cst_15 = arith.constant dense<0.000000e+00> : vector<8x128xf32>
    %21 = tpu.matmul %18, %20, %cst_15 {dimension_numbers = #tpu.dot_dimension_numbers<[1], [0], [0], [1], [0, 0, 1, 1], [], []>} : vector<8x128xbf16>, vector<128x128xbf16>, vector<8x128xf32> -> vector<8x128xf32>
    %c2_16 = arith.constant 2 : index
    %c0_17 = arith.constant 0 : index
    %22 = vector.load %arg3[%c2_16, %c0_17] : memref<8x128xf32, #tpu.memory_space<vmem>>, vector<1x128xf32>
    %23 = vector.broadcast %22 : vector<1x128xf32> to vector<8x128xf32>
    %24 = arith.addf %21, %23 : vector<8x128xf32>
    %cst_18 = arith.constant 0.000000e+00 : f32
    %25 = vector.broadcast %cst_18 : f32 to vector<8x128xf32>
    %26 = arith.maximumf %24, %25 : vector<8x128xf32>
    %27 = arith.truncf %26 : vector<8x128xf32> to vector<8x128xbf16>
    %c3 = arith.constant 3 : index
    %c0_19 = arith.constant 0 : index
    %c0_20 = arith.constant 0 : index
    %28 = vector.load %arg2[%c3, %c0_19, %c0_20] : memref<4x128x128xbf16, #tpu.memory_space<vmem>>, vector<1x128x128xbf16>
    %29 = vector.shape_cast %28 : vector<1x128x128xbf16> to vector<128x128xbf16>
    %cst_21 = arith.constant dense<0.000000e+00> : vector<8x128xf32>
    %30 = tpu.matmul %27, %29, %cst_21 {dimension_numbers = #tpu.dot_dimension_numbers<[1], [0], [0], [1], [0, 0, 1, 1], [], []>} : vector<8x128xbf16>, vector<128x128xbf16>, vector<8x128xf32> -> vector<8x128xf32>
    %c3_22 = arith.constant 3 : index
    %c0_23 = arith.constant 0 : index
    %31 = vector.load %arg3[%c3_22, %c0_23] : memref<8x128xf32, #tpu.memory_space<vmem>>, vector<1x128xf32>
    %32 = vector.broadcast %31 : vector<1x128xf32> to vector<8x128xf32>
    %33 = arith.addf %30, %32 : vector<8x128xf32>
    %cst_24 = arith.constant 0.000000e+00 : f32
    %34 = vector.broadcast %cst_24 : f32 to vector<8x128xf32>
    %35 = arith.maximumf %33, %34 : vector<8x128xf32>
    %c4 = arith.constant 4 : index
    %c0_25 = arith.constant 0 : index
    %36 = vector.load %arg3[%c4, %c0_25] : memref<8x128xf32, #tpu.memory_space<vmem>>, vector<1x128xf32>
    %37 = vector.broadcast %36 : vector<1x128xf32> to vector<8x128xf32>
    %38 = arith.mulf %35, %37 : vector<8x128xf32>
    %cst_26 = arith.constant dense<0.000000e+00> : vector<8xf32>
    %39 = vector.multi_reduction <add>, %38, %cst_26 [1] : vector<8x128xf32> to vector<8xf32>
    %40 = vector.shape_cast %39 : vector<8xf32> to vector<8x1xf32>
    %c5 = arith.constant 5 : index
    %c0_27 = arith.constant 0 : index
    %41 = vector.load %arg3[%c5, %c0_27] : memref<8x128xf32, #tpu.memory_space<vmem>>, vector<1x1xf32>
    %42 = vector.broadcast %41 : vector<1x1xf32> to vector<8x1xf32>
    %43 = arith.addf %40, %42 : vector<8x1xf32>
    %c0_28 = arith.constant 0 : index
    %c0_29 = arith.constant 0 : index
    %44 = vector.load %arg4[%c0_28, %c0_29] : memref<8x1xf32, #tpu.memory_space<vmem>>, vector<8x1xf32>
    tpu.vector_store %arg4[%c0_28, %c0_29], %43 {strides = array<i32>} : memref<8x1xf32, #tpu.memory_space<vmem>>, vector<8x1xf32>,
    return
  }
  func.func @transform_0(%arg0: i32) -> (i32, i32) {
    %c0_i32 = arith.constant 0 : i32
    %c0_i32_0 = arith.constant 0 : i32
    return %arg0, %c0_i32 : i32, i32
  }
  func.func @transform_1(%arg0: i32) -> (i32, i32, i32) {
    %c0_i32 = arith.constant 0 : i32
    %c0_i32_0 = arith.constant 0 : i32
    %c0_i32_1 = arith.constant 0 : i32
    %c0_i32_2 = arith.constant 0 : i32
    return %c0_i32, %c0_i32_0, %c0_i32_1 : i32, i32, i32
  }
  func.func @transform_2(%arg0: i32) -> (i32, i32) {
    %c0_i32 = arith.constant 0 : i32
    %c0_i32_0 = arith.constant 0 : i32
    %c0_i32_1 = arith.constant 0 : i32
    return %c0_i32, %c0_i32_0 : i32, i32
  }
  func.func @transform_3(%arg0: i32) -> (i32, i32) {
    %c0_i32 = arith.constant 0 : i32
    %c0_i32_0 = arith.constant 0 : i32
    return %arg0, %c0_i32 : i32, i32
  }
}

</mosaic_0001>

<bundles_post_ra>
// kernel: nn_5l_forward.1
= control target key start
LH: loop header
LB: loop body
LE: loop exit
PB: predicated region body
PF: predicated region fallthrough
CT: control target
= control target key end

     0   :  { %8 = vsyncpa [#allocation3], 0  ;;  %s639_s12 = smov [#allocation2]   ;;  %s734_s0 = inlined_call_operand.vmem [shape: bf16[8,32], index: 0, kind: input, shape index: {}]   ;;  %s735_s1 = inlined_call_operand.hbm [shape: bf16[4,128,128], index: 1, kind: input, shape index: {}]   ;;  %s736_s2 = inlined_call_operand.vmem [shape: f32[8,128], index: 2, kind: input, shape index: {}]   ;;  %s737_s3 = inlined_call_operand.vmem [shape: f32[8,1], index: 3, kind: output, shape index: {}]  }
   0x1   :  { %s16_s13 = sshll.u32 %s639_s12, 4  ;;  %s615_s16 = scalar_lea.hbm %s735_s1, 4096  ;;  %s17_s13 = int_to_ptr.vmem [resolvable:$true] %s16_s13 }
   0x2   :  { %p616_p0 = scmp.ne.s32.totalorder %s735_s1, %s615_s16  ;;  %p619_p1 = scmp.lt.u32.totalorder %s615_s16, %s735_s1 }
   0x4   :  { %p621_p2 = pnand %p619_p1, %p616_p0 }
   0x6   :  { %624 = shalt.err (!%p621_p2)
}
   0x7   :  { %s625_s21 = scalar_lea.vmem %s17_s13, 4096  ;;  %p630_p4 = scmp.lt.s32.totalorder %s17_s13, %s17_s13 }
   0x8   :  { %p626_p3 = scmp.ne.s32.totalorder %s17_s13, %s625_s21  ;;  %p631_p5 = scmp.lt.s32.totalorder %s625_s21, %s625_s21 }
   0xa   :  { %p632_p6 = por %p631_p5, %p630_p4 }
   0xc   :  { %p633_p7 = pnand %p632_p6, %p626_p3 }
   0xe   :  { %636 = shalt.err (!%p633_p7)
}
   0xf   :  { %s640_s22 = smov 64   ;;  %s641_s23 = smov 4  }
  0x10   :  { %22 = dma.hbm_to_vmem [thread:$0]  %s735_s1, 4096, %s17_s13, [#allocation3], %s640_s22, %s640_s22, %s641_s23  }
  0x11   :  { %637 = dma.done.wait [#allocation3], 4096  }
  0x12   :  { %638 = vsyncadd [#allocation3], 4294963200  ;;  %v642_v0 = vmov 0.0   ;;  %vm643_vm0 = vmmov 0   ;;  %v589_v1 = vld [vmem:[#allocation2] sm:$0xff]   ;;  %v590_v2 = vld [vmem:[#allocation2 + $0x8] sm:$0xff]  }
  0x13   :  { %516 = vmatprep.subr.bf16.mxu0 %v642_v0  ;;  %520 = vmatprep.mubr.msk.bf16.mxu0 %vm643_vm0, %v642_v0  ;;  %v591_v3 = vld [vmem:[#allocation2 + $0x40] sm:$0xff]   ;;  %vm51_vm1 = vcmask 261120   ;;  %v592_v4 = vld [vmem:[#allocation2 + $0x48] sm:$0xff]   ;;  %v593_v6 = vld [vmem:[#allocation2 + $0x50] sm:$0xff]   ;;  %vm446_vm2 = vcmask 7168  }
  0x14   :  { %524 = vmatprep.subr.bf16.mxu1 %v642_v0  ;;  %540 = vmatprep.mubr.msk.bf16.mxu1 %vm643_vm0, %v642_v0  ;;  %v29_v5 = vld [vmem:[%s734_s0] sm:$0xf]  ;;  %v594_v7 = vld [vmem:[#allocation2 + $0x58] sm:$0xff]   ;;  %v596_v9 = vld [vmem:[#allocation2 + $0x68] sm:$0xff]  }
  0x15   :  { %517 = vmatpush3.bf16.msra.mxu0 %v589_v1  ;;  %525 = vmatpush3.bf16.msra.mxu1 %v591_v3  ;;  %v595_v8 = vld [vmem:[#allocation2 + $0x60] sm:$0xff]   ;;  %v597_v10 = vld [vmem:[#allocation2 + $0x70] sm:$0xff]   ;;  %v598_v11 = vld [vmem:[#allocation2 + $0x78] sm:$0xff]  }
  0x16   :  { %518 = vmatprep.subr.bf16.mxu0 %v642_v0  ;;  %526 = vmatprep.subr.bf16.mxu1 %v642_v0  ;;  %v599_v12 = vld [vmem:[#allocation2 + $0x80] sm:$0xff]   ;;  %v600_v13 = vld [vmem:[#allocation2 + $0x88] sm:$0xff]   ;;  %v601_v14 = vld [vmem:[#allocation2 + $0x90] sm:$0xff]  }
  0x17   :  { %v602_v15 = vld [vmem:[#allocation2 + $0x98] sm:$0xff]   ;;  %v603_v16 = vld [vmem:[#allocation2 + $0xa0] sm:$0xff]   ;;  %v604_v17 = vld [vmem:[#allocation2 + $0xa8] sm:$0xff]  }
  0x18   :  { %v453_v18 = vld [vmem:[%s736_s2] ss:$0 sm:$0xff]  ;;  %v605_v26 = vld [vmem:[#allocation2 + $0xb0] sm:$0xff]   ;;  %v606_v27 = vld [vmem:[#allocation2 + $0xb8] sm:$0xff]  }
  0x19   :  { %519 = vmatpush3.bf16.msra.mxu0 %v590_v2  ;;  %527 = vmatpush3.bf16.msra.mxu1 %v592_v4  ;;  %v607_v28 = vld [vmem:[#allocation2 + $0xc0] sm:$0xff]   ;;  %v608_v29 = vld [vmem:[#allocation2 + $0xc8] sm:$0xff]   ;;  %v609_v30 = vld [vmem:[#allocation2 + $0xd0] sm:$0xff]  }
  0x1a   :  { %544 = vmatprep.subr.bf16.mxu0 %v642_v0  ;;  %528 = vmatprep.subr.bf16.mxu1 %v642_v0  ;;  %v610_v31 = vld [vmem:[#allocation2 + $0xd8] sm:$0xff]   ;;  %v611_v32 = vld [vmem:[#allocation2 + $0xe0] sm:$0xff]   ;;  %v612_v33 = vld [vmem:[#allocation2 + $0xe8] sm:$0xff]  }
  0x1b   :  { %v457_v34 = vld [vmem:[%s736_s2 + $0x1] ss:$0 sm:$0xff]  ;;  %v613_v42 = vld [vmem:[#allocation2 + $0xf0] sm:$0xff]   ;;  %v614_v43 = vld [vmem:[#allocation2 + $0xf8] sm:$0xff]  }
  0x1c   :  { %521 = vmatmul.mubr.msk.bf16.vlgmr.msra.gmra.mrb[0].mxu0 %vm51_vm1, %v29_v5  ;;  %v466_v44 = vld [vmem:[%s736_s2 + $0x2] ss:$0 sm:$0xff]  ;;  %v475_v52 = vld [vmem:[%s736_s2 + $0x3] ss:$0 sm:$0xff]  ;;  %v484_v57 = vld [vmem:[%s736_s2 + $0x4] ss:$0 sm:$0xff] }
  0x1d   :  { %560 = vmatprep.mubr.msk.bf16.mxu0 %vm643_vm0, %v642_v0  ;;  %529 = vmatpush3.bf16.msra.mxu1 %v593_v6  ;;  %v485_v61 = vld [vmem:[%s736_s2 + $0x5] ss:$0 sm:$0xff] }
  0x1e   :  { %530 = vmatprep.subr.bf16.mxu1 %v642_v0  ;;  %545 = vmatpush3.bf16.msra.mxu0 %v599_v12 }
  0x1f   :  { %546 = vmatprep.subr.bf16.mxu0 %v642_v0 }
  0x21   :  { %531 = vmatpush3.bf16.msra.mxu1 %v594_v7 }
  0x22   :  { %532 = vmatprep.subr.bf16.mxu1 %v642_v0  ;;  %547 = vmatpush3.bf16.msra.mxu0 %v600_v13 }
  0x23   :  { %548 = vmatprep.subr.bf16.mxu0 %v642_v0 }
  0x25   :  { %533 = vmatpush3.bf16.msra.mxu1 %v595_v8 }
  0x26   :  { %534 = vmatprep.subr.bf16.mxu1 %v642_v0  ;;  %549 = vmatpush3.bf16.msra.mxu0 %v601_v14 }
  0x27   :  { %550 = vmatprep.subr.bf16.mxu0 %v642_v0 }
  0x29   :  { %535 = vmatpush3.bf16.msra.mxu1 %v596_v9 }
  0x2a   :  { %536 = vmatprep.subr.bf16.mxu1 %v642_v0  ;;  %551 = vmatpush3.bf16.msra.mxu0 %v602_v15 }
  0x2b   :  { %552 = vmatprep.subr.bf16.mxu0 %v642_v0 }
  0x2d   :  { %537 = vmatpush3.bf16.msra.mxu1 %v597_v10 }
  0x2e   :  { %538 = vmatprep.subr.bf16.mxu1 %v642_v0  ;;  %553 = vmatpush3.bf16.msra.mxu0 %v603_v16 }
  0x2f   :  { %554 = vmatprep.subr.bf16.mxu0 %v642_v0 }
  0x31   :  { %539 = vmatpush3.bf16.msra.mxu1 %v598_v11 }
  0x32   :  { %564 = vmatprep.subr.bf16.mxu1 %v642_v0  ;;  %555 = vmatpush3.bf16.msra.mxu0 %v604_v17 }
  0x33   :  { %556 = vmatprep.subr.bf16.mxu0 %v642_v0 }
  0x36   :  { %557 = vmatpush3.bf16.msra.mxu0 %v605_v26 }
  0x37   :  { %558 = vmatprep.subr.bf16.mxu0 %v642_v0 }
  0x3a   :  { %559 = vmatpush3.bf16.msra.mxu0 %v606_v27 }
  0xef   :  { %v89_v19 = vpop.f32.mrb[0].mxu0 }
  0xf0   :  { %v90_v20 = vadd.f32 %v453_v18, %v89_v19  ;;  %v522_v21 = vpop.f32.mrb[1].mxu0 }
  0xf1   :  { %v92_v22 = vpop.f32.mrb[2].mxu0 }
  0xf2   :  { %v95_v23 = vmax.f32 %v90_v20, 0.0  ;;  %v523_v24 = vpop.f32.mrb[3].mxu0 }
  0xf4   :  { %v96_v25 = vpack.c.bf16 %v95_v23, %v95_v23 }
  0xf6   :  { %541 = vmatmul.mubr.bf16.vlgmr.msra.gmra.mrb[0].mxu1 %v96_v25 }
  0xf7   :  { %580 = vmatprep.mubr.msk.bf16.mxu1 %vm643_vm0, %v642_v0  ;;  %565 = vmatpush3.bf16.msra.mxu1 %v607_v28 }
  0xf8   :  { %566 = vmatprep.subr.bf16.mxu1 %v642_v0 }
  0xfb   :  { %567 = vmatpush3.bf16.msra.mxu1 %v608_v29 }
  0xfc   :  { %568 = vmatprep.subr.bf16.mxu1 %v642_v0 }
  0xff   :  { %569 = vmatpush3.bf16.msra.mxu1 %v609_v30 }
 0x100   :  { %570 = vmatprep.subr.bf16.mxu1 %v642_v0 }
 0x103   :  { %571 = vmatpush3.bf16.msra.mxu1 %v610_v31 }
 0x104   :  { %572 = vmatprep.subr.bf16.mxu1 %v642_v0 }
 0x107   :  { %573 = vmatpush3.bf16.msra.mxu1 %v611_v32 }
 0x108   :  { %574 = vmatprep.subr.bf16.mxu1 %v642_v0 }
 0x10b   :  { %575 = vmatpush3.bf16.msra.mxu1 %v612_v33 }
 0x10c   :  { %576 = vmatprep.subr.bf16.mxu1 %v642_v0 }
 0x10f   :  { %577 = vmatpush3.bf16.msra.mxu1 %v613_v42 }
 0x110   :  { %578 = vmatprep.subr.bf16.mxu1 %v642_v0 }
 0x113   :  { %579 = vmatpush3.bf16.msra.mxu1 %v614_v43 }
 0x1c9   :  { %v201_v35 = vpop.f32.mrb[0].mxu1 }
 0x1ca   :  { %v202_v36 = vadd.f32 %v457_v34, %v201_v35  ;;  %v542_v37 = vpop.f32.mrb[1].mxu1 }
 0x1cb   :  { %v204_v38 = vpop.f32.mrb[2].mxu1 }
 0x1cc   :  { %v207_v39 = vmax.f32 %v202_v36, 0.0  ;;  %v543_v40 = vpop.f32.mrb[3].mxu1 }
 0x1ce   :  { %v208_v41 = vpack.c.bf16 %v207_v39, %v207_v39 }
 0x1d0   :  { %561 = vmatmul.mubr.bf16.vlgmr.msra.gmra.mrb[4].mxu0 %v208_v41 }
 0x2a3   :  { %v313_v45 = vpop.f32.mrb[4].mxu0 }
 0x2a4   :  { %v314_v46 = vadd.f32 %v466_v44, %v313_v45  ;;  %v562_v47 = vpop.f32.mrb[5].mxu0 }
 0x2a5   :  { %v316_v48 = vpop.f32.mrb[6].mxu0 }
 0x2a6   :  { %v319_v49 = vmax.f32 %v314_v46, 0.0  ;;  %v563_v50 = vpop.f32.mrb[7].mxu0 }
 0x2a8   :  { %v320_v51 = vpack.c.bf16 %v319_v49, %v319_v49 }
 0x2aa   :  { %581 = vmatmul.mubr.bf16.vlgmr.msra.gmra.mrb[4].mxu1 %v320_v51 }
 0x37d   :  { %v425_v53 = vpop.f32.mrb[4].mxu1 }
 0x37e   :  { %v426_v54 = vadd.f32 %v475_v52, %v425_v53  ;;  %v582_v55 = vpop.f32.mrb[5].mxu1 }
 0x37f   :  { %v428_v56 = vpop.f32.mrb[6].mxu1 }
 0x380   :  { %v431_v58 = vmax.f32 %v426_v54, 0.0  ;;  %v583_v59 = vpop.f32.mrb[7].mxu1 }
 0x382   :  { %v437_v60 = vmul.f32 %v484_v57, %v431_v58 }
 0x384   :  { %438 = vadd.xlane.f32.xlu0 %v437_v60 }
 0x411   :  { %v439_v62 = vpop.xlane.xlu0 %438 }
 0x412   :  { %v445_v63 = vadd.f32 %v485_v61, %v439_v62 }
 0x414   :  { %447 = vst.msk [vmem:[%s737_s3] sm:$0xff] %vm446_vm2, %v445_v63 }
 0x415   :  { %452 = vsyncpa [#allocation3], 1 }

</bundles_post_ra>
